<compile_context>
chip_gen: v7x
topology: tpu7x:2x2x1
jax: 0.10.0
libtpu: 0.0.40
codegen_flags: <defaults>
</compile_context>

<pallas_src>
import math
from functools import partial

import jax
import jax.numpy as jnp
from jax.experimental import pallas as pl
from jax.experimental.pallas import tpu as pltpu


def mlp_agent_kernel(xt_ref,
                     w1_ref, b1_ref,
                     w2_ref, b2_ref,
                     w3_ref, b3_ref,
                     w4_ref, b4_ref,
                     out_ref,
                     *, return_logits=False):
    """Transposed dataflow: activations are (features, TB); batch is the lane axis."""
    eps = 1e-8
    xt = xt_ref[...]                                          # (input_shape, TB)

    # fc1: h^T = W1 @ x^T   (W1 in nn.Linear (out, in) layout) — MXU, f32 accumulate.
    h = jnp.dot(w1_ref[...], xt, preferred_element_type=jnp.float32) + b1_ref[...]

    # AvgL1Norm over the feature axis (= sublane axis here); exact divide (not EUP-bound).
    denom = jnp.maximum(jnp.mean(jnp.abs(h), axis=0, keepdims=True), eps)
    h = h / denom

    # relu(fc2)
    h = jnp.dot(w2_ref[...], h.astype(w2_ref.dtype),
                preferred_element_type=jnp.float32) + b2_ref[...]
    h = jnp.maximum(h, 0.0)

    # relu(fc3)
    h = jnp.dot(w3_ref[...], h.astype(w3_ref.dtype),
                preferred_element_type=jnp.float32) + b3_ref[...]
    h = jnp.maximum(h, 0.0)

    # fc4 (+ tanh unless agent_return_logits)
    a = jnp.dot(w4_ref[...], h.astype(w4_ref.dtype),
                preferred_element_type=jnp.float32) + b4_ref[...]
    out_ref[...] = (a if return_logits else jnp.tanh(a)).astype(out_ref.dtype)


def _round_up(n, m):
    return ((n + m - 1) // m) * m


def _choose_tile_cols(batch, block_cols):
    """Batch-tile width on the lane axis.

    Large tiles amortize the ~0.35us per-grid-step overhead; for big batches keep
    >= 4 grid steps so the 'parallel' axis can shard across v7x's two TensorCores
    while each core still double-buffers.  If a single block covers the whole batch,
    use the exact batch size (full-extent block: no partial-block OOB columns).
    """
    LANE = 128
    MIN_TILE = 1024
    TARGET_STEPS = 4
    batch = max(int(batch), 1)
    cap = max(LANE, _round_up(int(block_cols), LANE))
    need = _round_up(batch, LANE)
    tb = _round_up(pl.cdiv(batch, TARGET_STEPS), LANE)   # aim for >= 4 steps
    tb = max(tb, min(MIN_TILE, need))                    # but never below 1024 cols (or B)
    tb = min(tb, cap, need)                              # respect cap and batch size
    tb = max(tb, LANE)
    if tb >= batch:                                      # single block spans everything
        tb = batch
    return tb


def mlp_agent_forward(inputs, hidden_state, params, *,
                      block_cols=8192, agent_return_logits=False):
    """MLPAgent1 forward.

    inputs: (..., input_shape); params in nn.Linear layout (w: (out, in), b: (out,)).
    Returns {'actions': (B, n_actions), 'hidden_state': hidden_state} like the module.
    No wrapper-side cast of x: compute dtype follows the input dtype (pass bf16 inputs
    to get the bf16 MXU path without an extra HBM conversion pass).
    """
    w1, w2, w3, w4 = params["w1"], params["w2"], params["w3"], params["w4"]
    hidden_dim, input_shape = w1.shape
    n_actions = w4.shape[0]

    x = inputs.reshape(-1, input_shape)          # (B, input_shape) — keep caller dtype
    B = x.shape[0]
    xt = x.T                                     # (input_shape, B): batch on the lane axis

    cdt = x.dtype
    w1 = w1.astype(cdt)
    w2 = w2.astype(cdt)
    w3 = w3.astype(cdt)
    w4 = w4.astype(cdt)
    # Biases stay f32 (added after the f32 MXU accumulation); shaped (out, 1) so they
    # lane-broadcast across the batch.
    b1 = params["b1"].reshape(hidden_dim, 1).astype(jnp.float32)
    b2 = params["b2"].reshape(hidden_dim, 1).astype(jnp.float32)
    b3 = params["b3"].reshape(hidden_dim, 1).astype(jnp.float32)
    b4 = params["b4"].reshape(n_actions, 1).astype(jnp.float32)

    TB = _choose_tile_cols(B, block_cols)
    grid = (pl.cdiv(B, TB),)

    act_map = lambda i: (0, i)     # activation tiles march along the batch (lane) axis
    res_map = lambda i: (0, 0)     # weights/biases: constant block -> VMEM-resident

    # Scoped-VMEM estimate: double-buffered x/out tiles + f32 intermediates + weights.
    # Raise the limit so large tiles also fit v5e's 16 MiB default; keep << v7x's 64 MiB.
    itemsize = jnp.dtype(cdt).itemsize
    est = (2 * TB * input_shape * itemsize
           + 2 * TB * n_actions * itemsize
           + 6 * TB * hidden_dim * 4
           + (1 << 20))
    vmem_limit = int(min(max(2 * est, 32 << 20), 48 << 20))

    # TODO(synk): weight/bias specs could use pipeline_mode=pl.Buffered(1) (constant
    # index maps don't need a second buffer) — skipped as a micro-optimization.
    out_t = pl.pallas_call(
        partial(mlp_agent_kernel, return_logits=agent_return_logits),
        out_shape=jax.ShapeDtypeStruct((n_actions, B), cdt),
        grid_spec=pltpu.PrefetchScalarGridSpec(
            num_scalar_prefetch=0,
            grid=grid,
            in_specs=[
                pl.BlockSpec((input_shape, TB), act_map),
                pl.BlockSpec((hidden_dim, input_shape), res_map),
                pl.BlockSpec((hidden_dim, 1), res_map),
                pl.BlockSpec((hidden_dim, hidden_dim), res_map),
                pl.BlockSpec((hidden_dim, 1), res_map),
                pl.BlockSpec((hidden_dim, hidden_dim), res_map),
                pl.BlockSpec((hidden_dim, 1), res_map),
                pl.BlockSpec((n_actions, hidden_dim), res_map),
                pl.BlockSpec((n_actions, 1), res_map),
            ],
            out_specs=pl.BlockSpec((n_actions, TB), act_map),
        ),
        compiler_params=pltpu.CompilerParams(
            dimension_semantics=("parallel",),     # shard batch tiles across TCs (v7x)
            vmem_limit_bytes=vmem_limit,
        ),
    )(xt, w1, b1, w2, b2, w3, b3, w4, b4)

    # Tiny (n_actions, B) -> (B, n_actions) transpose back to the module's layout.
    return {"actions": out_t.T, "hidden_state": hidden_state}


def init_params(key, input_shape, hidden_dim, n_actions):
    """Deterministic init mimicking PyTorch nn.Linear default (uniform +-1/sqrt(fan_in)).
    Weights are stored in nn.Linear layout: (out_features, in_features)."""
    def linear(k, fan_in, fan_out):
        kw, kb = jax.random.split(k)
        bound = 1.0 / math.sqrt(fan_in)
        w = jax.random.uniform(kw, (fan_out, fan_in), jnp.float32, -bound, bound)
        b = jax.random.uniform(kb, (fan_out,), jnp.float32, -bound, bound)
        return w, b

    k1, k2, k3, k4 = jax.random.split(key, 4)
    w1, b1 = linear(k1, input_shape, hidden_dim)
    w2, b2 = linear(k2, hidden_dim, hidden_dim)
    w3, b3 = linear(k3, hidden_dim, hidden_dim)
    w4, b4 = linear(k4, hidden_dim, n_actions)
    return {"w1": w1, "b1": b1, "w2": w2, "b2": b2,
            "w3": w3, "b3": b3, "w4": w4, "b4": b4}


def reference_forward(inputs, hidden_state, params):
    """Pure-JAX reference of the PyTorch forward, for correctness checking."""
    eps = 1e-8
    x = inputs.reshape(-1, params["w1"].shape[1])
    h = x @ params["w1"].T + params["b1"]
    h = h / jnp.maximum(jnp.mean(jnp.abs(h), axis=-1, keepdims=True), eps)
    h = jax.nn.relu(h @ params["w2"].T + params["b2"])
    h = jax.nn.relu(h @ params["w3"].T + params["b3"])
    a = jnp.tanh(h @ params["w4"].T + params["b4"])
    return {"actions": a, "hidden_state": hidden_state}


if __name__ == "__main__":
    input_shape, hidden_dim, n_actions = 16, 32, 8

    key = jax.random.PRNGKey(0)
    k_params, k_a, k_b = jax.random.split(key, 3)

    params = init_params(k_params, input_shape, hidden_dim, n_actions)
    hidden_state = jnp.zeros((1, hidden_dim), jnp.float32)  # init_hidden()

    # 1) Small batch: single full-extent block (TB == B, no partial-block masking).
    inputs_small = jax.random.normal(k_a, (6, input_shape), jnp.float32)
    out_small = mlp_agent_forward(inputs_small, hidden_state, params)
    a_small = jax.block_until_ready(out_small["actions"])
    ref_small = reference_forward(inputs_small, hidden_state, params)["actions"]
    assert a_small.shape == (6, n_actions)
    assert jnp.allclose(a_small, ref_small, atol=2e-3, rtol=2e-3), "small-batch mismatch"

    # 2) Multi-step grid with a partial last tile (300 rows, forced 128-column tiles):
    #    exercises VMEM-resident weights across grid steps and masked partial writeback.
    inputs_big = jax.random.normal(k_b, (300, input_shape), jnp.float32)
    out_big = mlp_agent_forward(inputs_big, hidden_state, params, block_cols=128)
    a_big = jax.block_until_ready(out_big["actions"])
    ref_big = reference_forward(inputs_big, hidden_state, params)["actions"]
    assert a_big.shape == (300, n_actions)
    assert jnp.allclose(a_big, ref_big, atol=2e-3, rtol=2e-3), "large-batch mismatch"

    print("KERNEL_OK")
</pallas_src>

<mosaic_0001>
module attributes {stable_mosaic.version = 11 : i64} {
  func.func @mlp_agent_kernel(%arg0: i32, %arg1: memref<16x6xf32, #tpu.memory_space<vmem>>, %arg2: memref<32x16xf32, #tpu.memory_space<vmem>>, %arg3: memref<32x1xf32, #tpu.memory_space<vmem>>, %arg4: memref<32x32xf32, #tpu.memory_space<vmem>>, %arg5: memref<32x1xf32, #tpu.memory_space<vmem>>, %arg6: memref<32x32xf32, #tpu.memory_space<vmem>>, %arg7: memref<32x1xf32, #tpu.memory_space<vmem>>, %arg8: memref<8x32xf32, #tpu.memory_space<vmem>>, %arg9: memref<8x1xf32, #tpu.memory_space<vmem>>, %arg10: memref<8x6xf32, #tpu.memory_space<vmem>>) attributes {dimension_semantics = [#tpu.dimension_semantics<parallel>], iteration_bounds = array<i64: 1>, scalar_prefetch = 0 : i64, scratch_operands = 0 : i64, tpu.core_type = #tpu.core_type<tc>, window_params = [{transform_indices = @transform_0, window_bounds = array<i64: 16, 6>}, {pipeline_mode = #tpu.pipeline_mode<synchronous>, transform_indices = @transform_1, window_bounds = array<i64: 32, 16>}, {pipeline_mode = #tpu.pipeline_mode<synchronous>, transform_indices = @transform_2, window_bounds = array<i64: 32, 1>}, {pipeline_mode = #tpu.pipeline_mode<synchronous>, transform_indices = @transform_3, window_bounds = array<i64: 32, 32>}, {pipeline_mode = #tpu.pipeline_mode<synchronous>, transform_indices = @transform_4, window_bounds = array<i64: 32, 1>}, {pipeline_mode = #tpu.pipeline_mode<synchronous>, transform_indices = @transform_5, window_bounds = array<i64: 32, 32>}, {pipeline_mode = #tpu.pipeline_mode<synchronous>, transform_indices = @transform_6, window_bounds = array<i64: 32, 1>}, {pipeline_mode = #tpu.pipeline_mode<synchronous>, transform_indices = @transform_7, window_bounds = array<i64: 8, 32>}, {pipeline_mode = #tpu.pipeline_mode<synchronous>, transform_indices = @transform_8, window_bounds = array<i64: 8, 1>}, {transform_indices = @transform_9, window_bounds = array<i64: 8, 6>}]} {
    %c0 = arith.constant 0 : index
    %c0_0 = arith.constant 0 : index
    %0 = vector.load %arg1[%c0, %c0_0] : memref<16x6xf32, #tpu.memory_space<vmem>>, vector<16x6xf32>
    %c0_1 = arith.constant 0 : index
    %c0_2 = arith.constant 0 : index
    %1 = vector.load %arg2[%c0_1, %c0_2] : memref<32x16xf32, #tpu.memory_space<vmem>>, vector<32x16xf32>
    %cst = arith.constant dense<0.000000e+00> : vector<32x6xf32>
    %2 = tpu.matmul %1, %0, %cst {dimension_numbers = #tpu.dot_dimension_numbers<[1], [0], [0], [1], [0, 0, 1, 1], [], []>} : vector<32x16xf32>, vector<16x6xf32>, vector<32x6xf32> -> vector<32x6xf32>
    %c0_3 = arith.constant 0 : index
    %c0_4 = arith.constant 0 : index
    %3 = vector.load %arg3[%c0_3, %c0_4] : memref<32x1xf32, #tpu.memory_space<vmem>>, vector<32x1xf32>
    %4 = vector.broadcast %3 : vector<32x1xf32> to vector<32x6xf32>
    %5 = arith.addf %2, %4 : vector<32x6xf32>
    %6 = math.absf %5 : vector<32x6xf32>
    %cst_5 = arith.constant dense<0.000000e+00> : vector<6xf32>
    %7 = vector.multi_reduction <add>, %6, %cst_5 [0] : vector<32x6xf32> to vector<6xf32>
    %8 = vector.shape_cast %7 : vector<6xf32> to vector<1x6xf32>
    %cst_6 = arith.constant 3.200000e+01 : f32
    %9 = vector.broadcast %cst_6 : f32 to vector<1x6xf32>
    %10 = arith.divf %8, %9 : vector<1x6xf32>
    %cst_7 = arith.constant 9.99999993E-9 : f32
    %11 = vector.broadcast %cst_7 : f32 to vector<1x6xf32>
    %12 = arith.maximumf %10, %11 : vector<1x6xf32>
    %13 = vector.broadcast %12 : vector<1x6xf32> to vector<32x6xf32>
    %14 = arith.divf %5, %13 : vector<32x6xf32>
    %c0_8 = arith.constant 0 : index
    %c0_9 = arith.constant 0 : index
    %15 = vector.load %arg4[%c0_8, %c0_9] : memref<32x32xf32, #tpu.memory_space<vmem>>, vector<32x32xf32>
    %cst_10 = arith.constant dense<0.000000e+00> : vector<32x6xf32>
    %16 = tpu.matmul %15, %14, %cst_10 {dimension_numbers = #tpu.dot_dimension_numbers<[1], [0], [0], [1], [0, 0, 1, 1], [], []>} : vector<32x32xf32>, vector<32x6xf32>, vector<32x6xf32> -> vector<32x6xf32>
    %c0_11 = arith.constant 0 : index
    %c0_12 = arith.constant 0 : index
    %17 = vector.load %arg5[%c0_11, %c0_12] : memref<32x1xf32, #tpu.memory_space<vmem>>, vector<32x1xf32>
    %18 = vector.broadcast %17 : vector<32x1xf32> to vector<32x6xf32>
    %19 = arith.addf %16, %18 : vector<32x6xf32>
    %cst_13 = arith.constant 0.000000e+00 : f32
    %20 = vector.broadcast %cst_13 : f32 to vector<32x6xf32>
    %21 = arith.maximumf %19, %20 : vector<32x6xf32>
    %c0_14 = arith.constant 0 : index
    %c0_15 = arith.constant 0 : index
    %22 = vector.load %arg6[%c0_14, %c0_15] : memref<32x32xf32, #tpu.memory_space<vmem>>, vector<32x32xf32>
    %cst_16 = arith.constant dense<0.000000e+00> : vector<32x6xf32>
    %23 = tpu.matmul %22, %21, %cst_16 {dimension_numbers = #tpu.dot_dimension_numbers<[1], [0], [0], [1], [0, 0, 1, 1], [], []>} : vector<32x32xf32>, vector<32x6xf32>, vector<32x6xf32> -> vector<32x6xf32>
    %c0_17 = arith.constant 0 : index
    %c0_18 = arith.constant 0 : index
    %24 = vector.load %arg7[%c0_17, %c0_18] : memref<32x1xf32, #tpu.memory_space<vmem>>, vector<32x1xf32>
    %25 = vector.broadcast %24 : vector<32x1xf32> to vector<32x6xf32>
    %26 = arith.addf %23, %25 : vector<32x6xf32>
    %cst_19 = arith.constant 0.000000e+00 : f32
    %27 = vector.broadcast %cst_19 : f32 to vector<32x6xf32>
    %28 = arith.maximumf %26, %27 : vector<32x6xf32>
    %c0_20 = arith.constant 0 : index
    %c0_21 = arith.constant 0 : index
    %29 = vector.load %arg8[%c0_20, %c0_21] : memref<8x32xf32, #tpu.memory_space<vmem>>, vector<8x32xf32>
    %cst_22 = arith.constant dense<0.000000e+00> : vector<8x6xf32>
    %30 = tpu.matmul %29, %28, %cst_22 {dimension_numbers = #tpu.dot_dimension_numbers<[1], [0], [0], [1], [0, 0, 1, 1], [], []>} : vector<8x32xf32>, vector<32x6xf32>, vector<8x6xf32> -> vector<8x6xf32>
    %c0_23 = arith.constant 0 : index
    %c0_24 = arith.constant 0 : index
    %31 = vector.load %arg9[%c0_23, %c0_24] : memref<8x1xf32, #tpu.memory_space<vmem>>, vector<8x1xf32>
    %32 = vector.broadcast %31 : vector<8x1xf32> to vector<8x6xf32>
    %33 = arith.addf %30, %32 : vector<8x6xf32>
    %34 = math.tanh %33 : vector<8x6xf32>
    %c0_25 = arith.constant 0 : index
    %c0_26 = arith.constant 0 : index
    %35 = vector.load %arg10[%c0_25, %c0_26] : memref<8x6xf32, #tpu.memory_space<vmem>>, vector<8x6xf32>
    tpu.vector_store %arg10[%c0_25, %c0_26], %34 {strides = array<i32>} : memref<8x6xf32, #tpu.memory_space<vmem>>, vector<8x6xf32>,
    return
  }
  func.func @transform_0(%arg0: i32) -> (i32, i32) {
    %c0_i32 = arith.constant 0 : i32
    %c0_i32_0 = arith.constant 0 : i32
    return %c0_i32, %arg0 : i32, i32
  }
  func.func @transform_1(%arg0: i32) -> (i32, i32) {
    %c0_i32 = arith.constant 0 : i32
    %c0_i32_0 = arith.constant 0 : i32
    %c0_i32_1 = arith.constant 0 : i32
    return %c0_i32, %c0_i32_0 : i32, i32
  }
  func.func @transform_2(%arg0: i32) -> (i32, i32) {
    %c0_i32 = arith.constant 0 : i32
    %c0_i32_0 = arith.constant 0 : i32
    %c0_i32_1 = arith.constant 0 : i32
    return %c0_i32, %c0_i32_0 : i32, i32
  }
  func.func @transform_3(%arg0: i32) -> (i32, i32) {
    %c0_i32 = arith.constant 0 : i32
    %c0_i32_0 = arith.constant 0 : i32
    %c0_i32_1 = arith.constant 0 : i32
    return %c0_i32, %c0_i32_0 : i32, i32
  }
  func.func @transform_4(%arg0: i32) -> (i32, i32) {
    %c0_i32 = arith.constant 0 : i32
    %c0_i32_0 = arith.constant 0 : i32
    %c0_i32_1 = arith.constant 0 : i32
    return %c0_i32, %c0_i32_0 : i32, i32
  }
  func.func @transform_5(%arg0: i32) -> (i32, i32) {
    %c0_i32 = arith.constant 0 : i32
    %c0_i32_0 = arith.constant 0 : i32
    %c0_i32_1 = arith.constant 0 : i32
    return %c0_i32, %c0_i32_0 : i32, i32
  }
  func.func @transform_6(%arg0: i32) -> (i32, i32) {
    %c0_i32 = arith.constant 0 : i32
    %c0_i32_0 = arith.constant 0 : i32
    %c0_i32_1 = arith.constant 0 : i32
    return %c0_i32, %c0_i32_0 : i32, i32
  }
  func.func @transform_7(%arg0: i32) -> (i32, i32) {
    %c0_i32 = arith.constant 0 : i32
    %c0_i32_0 = arith.constant 0 : i32
    %c0_i32_1 = arith.constant 0 : i32
    return %c0_i32, %c0_i32_0 : i32, i32
  }
  func.func @transform_8(%arg0: i32) -> (i32, i32) {
    %c0_i32 = arith.constant 0 : i32
    %c0_i32_0 = arith.constant 0 : i32
    %c0_i32_1 = arith.constant 0 : i32
    return %c0_i32, %c0_i32_0 : i32, i32
  }
  func.func @transform_9(%arg0: i32) -> (i32, i32) {
    %c0_i32 = arith.constant 0 : i32
    %c0_i32_0 = arith.constant 0 : i32
    return %c0_i32, %arg0 : i32, i32
  }
}

</mosaic_0001>

<bundles_post_ra>
// kernel: tpu_custom_call.1
= control target key start
LH: loop header
LB: loop body
LE: loop exit
PB: predicated region body
PF: predicated region fallthrough
CT: control target
= control target key end

     0   :  { %vm63_vm0 = vcmask 130048   ;;  %v692_v4 = vmov 0   ;;  %s861_s0 = inlined_call_operand.vmem [shape: f32[16,6], index: 0, kind: input, shape index: {}]   ;;  %s862_s1 = inlined_call_operand.vmem [shape: f32[32,16], index: 1, kind: input, shape index: {}]   ;;  %s863_s2 = inlined_call_operand.vmem [shape: f32[32,1], index: 2, kind: input, shape index: {}]   ;;  %s864_s3 = inlined_call_operand.vmem [shape: f32[32,32], index: 3, kind: input, shape index: {}]   ;;  %s865_s4 = inlined_call_operand.vmem [shape: f32[32,1], index: 4, kind: input, shape index: {}]   ;;  %s866_s5 = inlined_call_operand.vmem [shape: f32[32,32], index: 5, kind: input, shape index: {}]   ;;  %s867_s6 = inlined_call_operand.vmem [shape: f32[32,1], index: 6, kind: input, shape index: {}]   ;;  %s868_s7 = inlined_call_operand.vmem [shape: f32[8,32], index: 7, kind: input, shape index: {}]   ;;  %s869_s8 = inlined_call_operand.vmem [shape: f32[8,1], index: 8, kind: input, shape index: {}]   ;;  %s870_s9 = inlined_call_operand.hbm [shape: f32[8,6], index: 9, kind: output, shape index: {}]  }
   0x1   :  { %v33_v0 = vld [vmem:[%s861_s0] sm:$0xff]  ;;  %v34_v1 = vld [vmem:[%s861_s0 + $0x8] sm:$0xff]  ;;  %662 = vset.pattern.permute.xlu0 %v692_v4  ;;  %663 = vset.pattern.permute.xlu1 %v692_v4  ;;  %v41_v6 = vld [vmem:[%s863_s2 + $0x10] sm:$0xff] }
   0x2   :  { %v35_v2 = vld [vmem:[%s862_s1] sm:$0xff]  ;;  %v631_v3 = vpack.c.bf16 %v34_v1, %v33_v0  ;;  %v36_v7 = vld [vmem:[%s862_s1 + $0x8] sm:$0xff]  ;;  %55 = vperm.xlu1 %663, %v41_v6   ;;  %v37_v9 = vld [vmem:[%s862_s1 + $0x10] sm:$0xff] }
   0x3   :  { %586 = vmatprep.mubr.msk.f32.mxu0 %vm63_vm0, %v35_v2  ;;  %v39_v5 = vld [vmem:[%s863_s2] sm:$0xff]  ;;  %v40_v8 = vld [vmem:[%s863_s2 + $0x8] sm:$0xff]  ;;  %v42_v10 = vld [vmem:[%s863_s2 + $0x18] sm:$0xff] }
   0x4   :  { %632 = vmatprep.subr.bf16.mxu0 %v631_v3  ;;  %45 = vperm.xlu0 %662, %v39_v5  }
   0x5   :  { %634 = vmatpush3.bf16.msra.mxu0 %v631_v3 }
   0x6   :  { %14 = vsyncpa [#allocation3], 0  ;;  %v38_v11 = vld [vmem:[%s862_s1 + $0x18] sm:$0xff]  ;;  %v191_v12 = vld [vmem:[%s865_s4] sm:$0xff]  ;;  %60 = vperm.xlu1 %663, %v42_v10   ;;  %vm215_vm1 = vcmask 261120   ;;  %vm165_vm2 = vcmask 48128  }
   0x7   :  { %v192_v13 = vld [vmem:[%s865_s4 + $0x8] sm:$0xff]  ;;  %v193_v14 = vld [vmem:[%s865_s4 + $0x10] sm:$0xff]  ;;  %v194_v15 = vld [vmem:[%s865_s4 + $0x18] sm:$0xff]  ;;  %vm694_vm3 = vmmov 0   ;;  %s696_s13 = smov [#allocation2]  }
   0x8   :  { %587 = vmatmul.mubr.msk.f32.vlgmr.msra.gmra.mrb[0].mxu0 %vm63_vm0, %v36_v7  ;;  %50 = vperm.xlu0 %662, %v40_v8   ;;  %v321_v16 = vld [vmem:[%s867_s6] sm:$0xff]  ;;  %v322_v17 = vld [vmem:[%s867_s6 + $0x8] sm:$0xff]  ;;  %v323_v18 = vld [vmem:[%s867_s6 + $0x10] sm:$0xff]  ;;  %s534_s1 = sshll.u32 %s696_s13, 4  ;;  %s535_s1 = int_to_ptr.vmem [resolvable:$true] %s534_s1 }
   0x9   :  { %589 = vmatprep.mubr.msk.f32.mxu0 %vm63_vm0, %v37_v9  ;;  %v324_v19 = vld [vmem:[%s867_s6 + $0x18] sm:$0xff]  ;;  %v447_v20 = vld [vmem:[%s869_s8] sm:$0xff]  ;;  %v188_v60 = vld [vmem:[%s864_s3 + $0x8] sm:$0xff]  ;;  %s668_s14 = scalar_lea.vmem %s535_s1, 128  ;;  %p673_p1 = scmp.lt.s32.totalorder %s535_s1, %s535_s1 }
   0xa   :  { %202 = vperm.xlu1 %663, %v192_v13   ;;  %v187_v21 = vld [vmem:[%s864_s3] sm:$0xff]  ;;  %v189_v61 = vld [vmem:[%s864_s3 + $0x10] sm:$0xff]  ;;  %v190_v62 = vld [vmem:[%s864_s3 + $0x18] sm:$0xff]  ;;  %p669_p0 = scmp.ne.s32.totalorder %s535_s1, %s668_s14  ;;  %p674_p2 = scmp.lt.s32.totalorder %s668_s14, %s668_s14 }
   0xb   :  { %600 = vmatprep.mubr.msk.f32.mxu1 %vm215_vm1, %v187_v21  ;;  %v317_v63 = vld [vmem:[%s866_s5] sm:$0xff]  ;;  %v693_v21 = vmov 0.0|0.0  }
   0xc   :  { %590 = vmatmul.mubr.msk.f32.gmra.mrb[2].mxu0 %vm63_vm0, %v38_v11  ;;  %197 = vperm.xlu0 %662, %v191_v12   ;;  %p675_p3 = por %p674_p2, %p673_p1 }
   0xd   :  { %614 = vmatprep.mubr.msk.f32.mxu0 %vm215_vm1, %v317_v63 }
   0xe   :  { %212 = vperm.xlu1 %663, %v194_v15   ;;  %p676_p4 = pnand %p675_p3, %p669_p0 }
  0x10   :  { %207 = vperm.xlu0 %662, %v193_v14  }
  0x12   :  { %332 = vperm.xlu1 %663, %v322_v17  }
  0x14   :  { %327 = vperm.xlu0 %662, %v321_v16  }
  0x16   :  { %342 = vperm.xlu1 %663, %v324_v19   ;;  %v319_v19 = vld [vmem:[%s866_s5 + $0x10] sm:$0xff] }
  0x18   :  { %337 = vperm.xlu0 %662, %v323_v18   ;;  %v318_v18 = vld [vmem:[%s866_s5 + $0x8] sm:$0xff] }
  0x1c   :  { %450 = vperm.xlu0 %662, %v447_v20   ;;  %v320_v20 = vld [vmem:[%s866_s5 + $0x18] sm:$0xff] }
  0x81   :  { %v56_v23 = vpop.permute.xlu1 %55 }
  0x83   :  { %v46_v22 = vpop.permute.xlu0 %45 }
  0x85   :  { %v61_v30 = vpop.permute.xlu1 %60 }
  0x87   :  { %v51_v24 = vpop.permute.xlu0 %50 }
  0x89   :  { %v203_v0 = vpop.permute.xlu1 %202 }
  0x8b   :  { %v198_v1 = vpop.permute.xlu0 %197 }
  0x8d   :  { %v213_v7 = vpop.permute.xlu1 %212 }
  0x8f   :  { %v208_v10 = vpop.permute.xlu0 %207 }
  0xdb   :  { %v588_v25 = vpop.f32.mrb[0].mxu0 }
  0xdc   :  { %v148_v26 = vadd.f32 %v588_v25, %v51_v24  ;;  %v142_v27 = vpop.f32.mrb[1].mxu0  ;;  %v328_v24 = vpop.permute.xlu0 %327 }
  0xdd   :  { %v143_v28 = vadd.f32 %v142_v27, %v46_v22  ;;  %v695_v22 = vmov 0.0  }
  0xde   :  { %v162_v29 = vand.u32 2147483647, %v148_v26 }
  0xdf   :  { %v161_v31 = vand.u32 2147483647, %v143_v28  ;;  %v591_v32 = vpop.f32.mrb[2].mxu0 }
  0xe0   :  { %v167_v33 = vsel %vm165_vm2, %v162_v29, 0.0  ;;  %v158_v34 = vadd.f32 %v591_v32, %v61_v30  ;;  %v152_v35 = vpop.f32.mrb[3].mxu0 }
  0xe1   :  { %v166_v36 = vsel %vm165_vm2, %v161_v31, 0.0  ;;  %v153_v37 = vadd.f32 %v152_v35, %v56_v23  ;;  %v333_v23 = vpop.permute.xlu1 %332 }
  0xe2   :  { %v168_v38 = vadd.f32 %v167_v33, %v166_v36  ;;  %v164_v39 = vand.u32 2147483647, %v158_v34  ;;  %v338_v33 = vpop.permute.xlu0 %337 }
  0xe3   :  { %v163_v40 = vand.u32 2147483647, %v153_v37 }
  0xe4   :  { %v171_v43 = vsel %vm165_vm2, %v164_v39, 0.0 }
  0xe5   :  { %v169_v41 = vsel %vm165_vm2, %v163_v40, 0.0  ;;  %v343_v30 = vpop.permute.xlu1 %342 }
  0xe6   :  { %v170_v42 = vadd.f32 %v169_v41, %v168_v38  ;;  %v446_v41 = vld [vmem:[%s868_s7] sm:$0xff] }
  0xe8   :  { %v172_v44 = vadd.f32 %v171_v43, %v170_v42  ;;  %v451_v42 = vpop.permute.xlu0 %450 }
  0xea   :  { %v173_v45 = vrot.slane %v172_v44, 4 }
  0xec   :  { %v174_v46 = vadd.f32 %v173_v45, %v172_v44 }
  0xee   :  { %v175_v47 = vrot.slane %v174_v46, 2 }
  0xf0   :  { %v176_v48 = vadd.f32 %v175_v47, %v174_v46 }
  0xf2   :  { %v177_v49 = vrot.slane %v176_v48, 1 }
  0xf4   :  { %v178_v50 = vadd.f32 %v177_v49, %v176_v48 }
  0xf6   :  { %v180_v51 = vmul.f32 0.03125, %v178_v50 }
  0xf8   :  { %v181_v52 = vmax.f32 %v180_v51, 1e-08 }
  0xfa   :  { %664 = vrcp.f32 %v181_v52 }
 0x104   :  { %v665_v53 = vpop.eup %664 }
 0x105   :  { %v185_v54 = vmul.f32 %v665_v53, %v153_v37  ;;  %v183_v55 = vmul.f32 %v665_v53, %v143_v28  ;;  %v184_v56 = vmul.f32 %v665_v53, %v148_v26  ;;  %v186_v57 = vmul.f32 %v665_v53, %v158_v34 }
 0x107   :  { %v635_v58 = vpack.c.bf16 %v184_v56, %v183_v55  ;;  %v639_v59 = vpack.c.bf16 %v186_v57, %v185_v54 }
 0x109   :  { %636 = vmatprep.subr.bf16.mxu1 %v635_v58 }
 0x10a   :  { %638 = vmatpush3.bf16.msra.mxu1 %v635_v58 }
 0x10b   :  { %640 = vmatprep.subr.bf16.mxu1 %v639_v59 }
 0x10e   :  { %642 = vmatpush3.bf16.msra.mxu1 %v639_v59 }
 0x10f   :  { %651 = vmatprep.subr.bf16.mxu1 %v693_v21 }
 0x111   :  { %601 = vmatmul.mubr.msk.f32.vlgmr.msra.gmra.mrb[0].mxu1 %vm215_vm1, %v188_v60 }
 0x112   :  { %603 = vmatprep.mubr.msk.f32.mxu1 %vm215_vm1, %v189_v61 }
 0x115   :  { %604 = vmatmul.mubr.msk.f32.gmra.mrb[2].mxu1 %vm215_vm1, %v190_v62 }
 0x116   :  { %628 = vmatprep.mubr.msk.f32.mxu1 %vm694_vm3, %v695_v22 }
 0x1e4   :  { %v602_v2 = vpop.f32.mrb[0].mxu1 }
 0x1e5   :  { %v300_v3 = vadd.f32 %v602_v2, %v203_v0  ;;  %v294_v4 = vpop.f32.mrb[1].mxu1 }
 0x1e6   :  { %v295_v5 = vadd.f32 %v294_v4, %v198_v1 }
 0x1e7   :  { %v314_v6 = vmax.f32 %v300_v3, 0.0 }
 0x1e8   :  { %v313_v8 = vmax.f32 %v295_v5, 0.0  ;;  %v605_v9 = vpop.f32.mrb[2].mxu1 }
 0x1e9   :  { %v310_v11 = vadd.f32 %v605_v9, %v213_v7  ;;  %v304_v12 = vpop.f32.mrb[3].mxu1 }
 0x1ea   :  { %v643_v13 = vpack.c.bf16 %v314_v6, %v313_v8  ;;  %v305_v14 = vadd.f32 %v304_v12, %v208_v10 }
 0x1eb   :  { %v316_v15 = vmax.f32 %v310_v11, 0.0 }
 0x1ec   :  { %v315_v16 = vmax.f32 %v305_v14, 0.0  ;;  %644 = vmatprep.subr.bf16.mxu0 %v643_v13 }
 0x1ed   :  { %646 = vmatpush3.bf16.msra.mxu0 %v643_v13 }
 0x1ee   :  { %v647_v17 = vpack.c.bf16 %v316_v15, %v315_v16 }
 0x1f0   :  { %648 = vmatprep.subr.bf16.mxu0 %v647_v17 }
 0x1f1   :  { %650 = vmatpush3.bf16.msra.mxu0 %v647_v17 }
 0x1f4   :  { %615 = vmatmul.mubr.msk.f32.vlgmr.msra.gmra.mrb[4].mxu0 %vm215_vm1, %v318_v18 }
 0x1f5   :  { %617 = vmatprep.mubr.msk.f32.mxu0 %vm215_vm1, %v319_v19 }
 0x1f8   :  { %618 = vmatmul.mubr.msk.f32.gmra.mrb[6].mxu0 %vm215_vm1, %v320_v20 }
 0x2c7   :  { %v616_v25 = vpop.f32.mrb[4].mxu0 }
 0x2c8   :  { %v429_v26 = vadd.f32 %v616_v25, %v333_v23  ;;  %v423_v27 = vpop.f32.mrb[5].mxu0 }
 0x2c9   :  { %v424_v28 = vadd.f32 %v423_v27, %v328_v24 }
 0x2ca   :  { %v443_v29 = vmax.f32 %v429_v26, 0.0 }
 0x2cb   :  { %v442_v31 = vmax.f32 %v424_v28, 0.0  ;;  %v619_v32 = vpop.f32.mrb[6].mxu0 }
 0x2cc   :  { %v439_v34 = vadd.f32 %v619_v32, %v343_v30  ;;  %v433_v35 = vpop.f32.mrb[7].mxu0 }
 0x2cd   :  { %v652_v36 = vpack.c.bf16 %v443_v29, %v442_v31  ;;  %v434_v37 = vadd.f32 %v433_v35, %v338_v33 }
 0x2ce   :  { %v445_v38 = vmax.f32 %v439_v34, 0.0 }
 0x2cf   :  { %v444_v39 = vmax.f32 %v434_v37, 0.0  ;;  %653 = vmatpush3.bf16.msra.mxu1 %v652_v36 }
 0x2d0   :  { %654 = vmatprep.subr.bf16.mxu1 %v693_v21 }
 0x2d1   :  { %v655_v40 = vpack.c.bf16 %v445_v38, %v444_v39 }
 0x2d3   :  { %656 = vmatpush3.bf16.msra.mxu1 %v655_v40 }
 0x2d6   :  { %629 = vmatmul.mubr.msk.f32.vlgmr.msra.gmra.mrb[4].mxu1 %vm215_vm1, %v446_v41 }
 0x3a9   :  { %v522_v43 = vpop.f32.mrb[4].mxu1 }
 0x3aa   :  { %v523_v44 = vadd.f32 %v522_v43, %v451_v42  ;;  %v630_v45 = vpop.f32.mrb[5].mxu1 }
 0x3ac   :  { %666 = vtanh.f32 %v523_v44 }
 0x3b6   :  { %v667_v46 = vpop.eup %666 }
 0x3b7   :  { %527 = vst.msk [vmem:[#allocation2] sm:$0xff] %vm165_vm2, %v667_v46 }
 0x3b8   :  { %679 = shalt.err (!%p676_p4)
}
 0x3b9   :  { %s680_s16 = scalar_lea.hbm %s870_s9, 128 }
 0x3ba   :  { %p681_p5 = scmp.ne.s32.totalorder %s870_s9, %s680_s16  ;;  %p684_p6 = scmp.lt.u32.totalorder %s680_s16, %s870_s9 }
 0x3bc   :  { %p686_p7 = pnand %p684_p6, %p681_p5 }
 0x3be   :  { %689 = shalt.err (!%p686_p7)
}
 0x3bf   :  { %537 = dma.vmem_to_hbm [thread:$0]  %s535_s1, 128, %s870_s9, [#allocation3]  }
 0x3c0   :  { %690 = dma.done.wait [#allocation3], 128  }
 0x3c1   :  { %691 = vsyncadd [#allocation3], 4294967168 }
 0x3c2   :  { %541 = vsyncpa [#allocation3], 1 }

</bundles_post_ra>
